<compile_context>
chip_gen: v5e
topology: v5e:2x2
jax: 0.10.0
libtpu: 0.0.40
codegen_flags: <defaults>
</compile_context>

<pallas_src>
import functools
import math

import jax
import jax.numpy as jnp
from jax.experimental import pallas as pl
from jax.experimental.pallas import tpu as pltpu


# ----------------------------------------------------------------------------
# Pallas kernel: per-cluster attention, C clusters per grid step.
# ----------------------------------------------------------------------------
def _smyrf_attend(q_ref, k_ref, v_ref, bias_ref, o_ref, lse_ref, *, inv_norm):
    q = q_ref[...]                                   # (C, Tq, D)   input dtype
    k = k_ref[...]                                   # (C, Tk, D)
    v = v_ref[...]                                   # (C, Tk, Dv)

    # Fold 1/norm_factor into Q: O(Tq*D) multiplies instead of O(Tq*Tk).
    if inv_norm != 1.0:
        q = q * jnp.asarray(inv_norm, dtype=q.dtype)

    # Q @ K^T expressed as a contraction on D (no materialized k.T), batched
    # over the C clusters, f32 accumulation on the MXU.
    inner = jnp.einsum('cqd,ckd->cqk', q, k,
                       preferred_element_type=jnp.float32)       # (C, Tq, Tk)
    if bias_ref is not None:
        # Reference semantics: the gathered attn_mask values are ADDED to the
        # logits (torch: `attn_mask.reshape(-1)[k_flat]...unsqueeze(1) + inner`).
        inner = inner + bias_ref[...][:, None, :].astype(jnp.float32)

    m = jnp.max(inner, axis=-1, keepdims=True)                   # (C, Tq, 1)
    e = jnp.exp(inner - m)
    s = jnp.sum(e, axis=-1, keepdims=True)
    lse = m + jnp.log(s)                     # torch.logsumexp(inner, -1, keepdim)
    # softmax = exp(inner - lse); one EUP reciprocal per row instead of an
    # O(Tq*Tk) VALU divide.
    dots = e * pl.reciprocal(s, approx=True)

    # softmax @ V in the operand dtype (bf16 MXU path when inputs are bf16),
    # f32 accumulation.
    bo = jnp.einsum('cqk,ckd->cqd', dots.astype(v.dtype), v,
                    preferred_element_type=jnp.float32)

    o_ref[...] = bo.astype(o_ref.dtype)
    # Lane-dense (C, Tq) store (Tq on the lane axis) instead of (Tq, 1).
    lse_ref[...] = lse[..., 0].astype(lse_ref.dtype)


def _smyrf_kernel_nobias(q_ref, k_ref, v_ref, o_ref, lse_ref, *, inv_norm):
    _smyrf_attend(q_ref, k_ref, v_ref, None, o_ref, lse_ref, inv_norm=inv_norm)


def _smyrf_kernel_bias(q_ref, k_ref, v_ref, b_ref, o_ref, lse_ref, *, inv_norm):
    _smyrf_attend(q_ref, k_ref, v_ref, b_ref, o_ref, lse_ref, inv_norm=inv_norm)


def _choose_cluster_batch(NB, Tq, Tk, D, Dv, itemsize,
                          vmem_budget_bytes=8 * 1024 * 1024, c_cap=1024):
    """Largest divisor C of NB whose double-buffered working set fits a
    conservative VMEM budget (safe for v7x's smaller 64 MiB VMEM)."""
    io_per_cluster = (Tq * D + Tk * D + Tk * Dv + Tk) * itemsize   # inputs (+bias)
    io_per_cluster += Tq * Dv * itemsize + Tq * 4                  # outputs (bo, lse)
    live_per_cluster = 2 * Tq * Tk * 4                             # f32 scores + probs
    per_cluster = 2 * io_per_cluster + live_per_cluster            # x2: double buffer
    c_max = max(1, int(vmem_budget_bytes // max(per_cluster, 1)))
    c_max = min(c_max, c_cap)
    if NB >= 2:
        c_max = min(c_max, NB // 2)    # keep >=2 grid steps (v7x megacore sharding)
    best = 1
    for c in range(1, min(NB, c_max) + 1):
        if NB % c == 0:
            best = c
    return best


def smyrf_block_attention(s_queries, s_keys, s_values, bias, norm_factor):
    """s_queries: (NB, Tq, D), s_keys: (NB, Tk, D), s_values: (NB, Tk, Dv),
    bias: (NB, Tk) additive float bias or None.
    Returns (bo: (NB, Tq, Dv) in value dtype, lse: (NB, Tq) f32)."""
    NB, Tq, D = s_queries.shape
    _, Tk, Dv = s_values.shape

    C = _choose_cluster_batch(NB, Tq, Tk, D, Dv, s_queries.dtype.itemsize)
    G = NB // C

    # Free reshapes: split the cluster dim into (grid, cluster-batch).
    q4 = s_queries.reshape(G, C, Tq, D)
    k4 = s_keys.reshape(G, C, Tk, D)
    v4 = s_values.reshape(G, C, Tk, Dv)

    in_specs = [
        pl.BlockSpec((None, C, Tq, D), lambda i: (i, 0, 0, 0)),
        pl.BlockSpec((None, C, Tk, D), lambda i: (i, 0, 0, 0)),
        pl.BlockSpec((None, C, Tk, Dv), lambda i: (i, 0, 0, 0)),
    ]
    args = [q4, k4, v4]
    inv_norm = 1.0 / float(norm_factor)
    if bias is None:
        # No-bias variant: avoid DMA-ing an all-zero bias tensor from HBM.
        kernel = functools.partial(_smyrf_kernel_nobias, inv_norm=inv_norm)
    else:
        in_specs.append(pl.BlockSpec((None, C, Tk), lambda i: (i, 0, 0)))
        args.append(bias.reshape(G, C, Tk))
        kernel = functools.partial(_smyrf_kernel_bias, inv_norm=inv_norm)

    bo, lse = pl.pallas_call(
        kernel,
        out_shape=(
            jax.ShapeDtypeStruct((G, C, Tq, Dv), s_values.dtype),
            jax.ShapeDtypeStruct((G, C, Tq), jnp.float32),
        ),
        grid=(G,),
        in_specs=in_specs,
        out_specs=(
            pl.BlockSpec((None, C, Tq, Dv), lambda i: (i, 0, 0, 0)),
            pl.BlockSpec((None, C, Tq), lambda i: (i, 0, 0)),
        ),
        compiler_params=pltpu.CompilerParams(dimension_semantics=("parallel",)),
    )(*args)
    return bo.reshape(NB, Tq, Dv), lse.reshape(NB, Tq)


# ----------------------------------------------------------------------------
# Plain-JAX glue reproducing SmyrfAttention.forward
# ----------------------------------------------------------------------------
def pad_to_multiple(x, multiple, axis=1):
    length = x.shape[axis]
    rem = length % multiple
    if rem == 0:
        return x
    pad_width = [(0, 0)] * x.ndim
    pad_width[axis] = (0, multiple - rem)
    return jnp.pad(x, pad_width)


def smyrf_attention_forward(query, key, value, *, n_hashes, q_attn_size, k_attn_size,
                            lsh_alpha, lsh_beta, attn_mask=None, norm_factor=1.0):
    b, q_seqlen_og, n_head, dim = query.shape
    _, k_seqlen_og, _, v_dim = value.shape

    key_padding_mask = attn_mask

    if q_seqlen_og % q_attn_size != 0:
        query = pad_to_multiple(query, q_attn_size, axis=1)
    if k_seqlen_og % k_attn_size != 0:
        key = pad_to_multiple(key, k_attn_size, axis=1)
        value = pad_to_multiple(value, k_attn_size, axis=1)

    # rearrange 'b t h e -> (b h) t e'
    query = jnp.transpose(query, (0, 2, 1, 3)).reshape(b * n_head, -1, dim)
    key = jnp.transpose(key, (0, 2, 1, 3)).reshape(b * n_head, -1, dim)
    value = jnp.transpose(value, (0, 2, 1, 3)).reshape(b * n_head, -1, v_dim)

    bs, q_seqlen, _ = query.shape
    _, k_seqlen, _ = key.shape
    assert q_seqlen // q_attn_size == k_seqlen // k_attn_size, \
        'Unequal number of clusters for query and key.'

    if attn_mask is not None:
        if attn_mask.ndim == 1:
            attn_mask = attn_mask[None, :]
        # Matches torch `.repeat(n_hashes, bs // B, 1)` (tiling) semantics.
        attn_mask = jnp.tile(attn_mask[None, :, :],
                             (n_hashes, bs // attn_mask.shape[0], 1))

    # --- XBOXPLUS asymmetric transform (torch.no_grad region) ---
    q_norms = jnp.linalg.norm(query, axis=-1, keepdims=True)       # (bs, Nq, 1)
    k_norms = jnp.linalg.norm(key, axis=-1, keepdims=True)         # (bs, Nk, 1)
    MQ = jnp.max(q_norms, axis=1, keepdims=True)
    MK = jnp.max(k_norms, axis=1, keepdims=True)
    q_ext = jnp.sqrt(jnp.maximum(MQ ** 2 + MK ** 2 - q_norms ** 2, 0.0))
    k_ext = jnp.sqrt(jnp.maximum(MQ ** 2 + MK ** 2 - k_norms ** 2, 0.0))
    Queries = jnp.concatenate([query, q_ext, jnp.zeros_like(q_ext)], axis=-1)
    Keys = jnp.concatenate([key, jnp.zeros_like(k_ext), k_ext], axis=-1)

    # --- E2LSH clustering (alpha/beta are deterministic LSH "parameters") ---
    q_hashed = jnp.transpose(jnp.einsum('bnd,dh->bnh', Queries, lsh_alpha) + lsh_beta,
                             (2, 0, 1))                             # (H, bs, Nq)
    k_hashed = jnp.transpose(jnp.einsum('bnd,dh->bnh', Keys, lsh_alpha) + lsh_beta,
                             (2, 0, 1))                             # (H, bs, Nk)
    if key_padding_mask is not None:
        kp = key_padding_mask
        if kp.ndim == 1:
            kp = kp[None, :]
        # Masked-out (falsy) keys hash to +inf so they land in the last clusters.
        k_hashed = jnp.where(kp.astype(bool), k_hashed, jnp.inf)

    q_positions = jnp.argsort(q_hashed, axis=-1).reshape(n_hashes, bs, -1)
    k_positions = jnp.argsort(k_hashed, axis=-1).reshape(n_hashes, bs, -1)
    q_rev_positions = jnp.argsort(q_positions, axis=-1)

    q_offset = jnp.arange(bs)[:, None] * q_seqlen
    k_offset = jnp.arange(bs)[:, None] * k_seqlen
    q_flat = (q_positions + q_offset).reshape(-1)
    k_flat = (k_positions + k_offset).reshape(-1)

    # Gather clusters (input dtype preserved end-to-end: no f32 upcast).
    s_queries = query.reshape(-1, dim)[q_flat].reshape(-1, q_attn_size, dim)
    s_keys = key.reshape(-1, dim)[k_flat].reshape(-1, k_attn_size, dim)
    s_values = value.reshape(-1, v_dim)[k_flat].reshape(-1, k_attn_size, v_dim)

    if attn_mask is not None:
        bias = attn_mask.reshape(-1)[k_flat].reshape(-1, k_attn_size).astype(jnp.float32)
    else:
        bias = None

    # --- hot path: per-cluster attention in Pallas ---
    bo, dots_lse = smyrf_block_attention(s_queries, s_keys, s_values, bias, norm_factor)
    # TODO(synk): attention_dropout=0.0 is an identity — not implemented for p>0.

    bo = bo.reshape(n_hashes, bs, q_seqlen, v_dim)

    # --- un-sort queries and combine across hash rounds ---
    q_offset2 = jnp.arange(bs * n_hashes)[:, None] * q_seqlen
    q_rev_flat = (q_rev_positions.reshape(-1, q_seqlen) + q_offset2).reshape(-1)
    o = bo.reshape(-1, v_dim)[q_rev_flat].reshape(n_hashes, bs, q_seqlen, v_dim)

    slogits = dots_lse.reshape(n_hashes, bs, -1)
    logits = jnp.take_along_axis(slogits, q_rev_positions, axis=2)
    probs = jnp.exp(logits - jax.scipy.special.logsumexp(logits, axis=0, keepdims=True))
    out = jnp.sum(o.astype(jnp.float32) * probs[..., None], axis=0)   # (bs, Nq, Dv)
    out = out.astype(value.dtype)

    # rearrange '(b h) t d -> b t h d'
    out = out.reshape(b, n_head, q_seqlen, v_dim).transpose(0, 2, 1, 3)
    if q_seqlen_og % q_attn_size != 0:
        out = out[:, :q_seqlen_og]
    return out, None


# ----------------------------------------------------------------------------
if __name__ == "__main__":
    key0 = jax.random.PRNGKey(0)
    kq, kk, kv, ka, kb = jax.random.split(key0, 5)

    b, t, h, e = 2, 16, 2, 16
    n_hashes = 2
    q_cluster_size = k_cluster_size = 8
    r = 1.0

    query = jax.random.normal(kq, (b, t, h, e), jnp.float32)
    key = jax.random.normal(kk, (b, t, h, e), jnp.float32)
    value = jax.random.normal(kv, (b, t, h, e), jnp.float32)

    # E2LSH parameters (deterministic, synthetic): alpha ~ N(0,1), beta ~ U(0, r).
    lsh_alpha = jax.random.normal(ka, (e + 2, n_hashes), jnp.float32)
    lsh_beta = jax.random.uniform(kb, (1, n_hashes), jnp.float32, 0.0, r)

    fwd = jax.jit(functools.partial(
        smyrf_attention_forward,
        n_hashes=n_hashes,
        q_attn_size=q_cluster_size,
        k_attn_size=k_cluster_size,
        norm_factor=math.sqrt(e),
    ))

    out, _ = fwd(query, key, value, lsh_alpha=lsh_alpha, lsh_beta=lsh_beta)
    jax.block_until_ready(out)

    assert out.shape == (b, t, h, e), out.shape
    assert bool(jnp.all(jnp.isfinite(out)))
    print("KERNEL_OK")
</pallas_src>

<mosaic_0001>
module attributes {stable_mosaic.version = 11 : i64} {
  func.func @_smyrf_kernel_nobias(%arg0: i32, %arg1: memref<1x8x8x16xf32, #tpu.memory_space<vmem>>, %arg2: memref<1x8x8x16xf32, #tpu.memory_space<vmem>>, %arg3: memref<1x8x8x16xf32, #tpu.memory_space<vmem>>, %arg4: memref<1x8x8x16xf32, #tpu.memory_space<vmem>>, %arg5: memref<1x8x8xf32, #tpu.memory_space<vmem>>) attributes {dimension_semantics = [#tpu.dimension_semantics<parallel>], iteration_bounds = array<i64: 2>, scalar_prefetch = 0 : i64, scratch_operands = 0 : i64, tpu.core_type = #tpu.core_type<tc>, window_params = [{transform_indices = @transform_0, window_bounds = array<i64: 1, 8, 8, 16>}, {transform_indices = @transform_1, window_bounds = array<i64: 1, 8, 8, 16>}, {transform_indices = @transform_2, window_bounds = array<i64: 1, 8, 8, 16>}, {transform_indices = @transform_3, window_bounds = array<i64: 1, 8, 8, 16>}, {transform_indices = @transform_4, window_bounds = array<i64: 1, 8, 8>}]} {
    %c0 = arith.constant 0 : index
    %c0_0 = arith.constant 0 : index
    %c0_1 = arith.constant 0 : index
    %c0_2 = arith.constant 0 : index
    %0 = vector.load %arg1[%c0, %c0_0, %c0_1, %c0_2] : memref<1x8x8x16xf32, #tpu.memory_space<vmem>>, vector<1x8x8x16xf32>
    %1 = vector.shape_cast %0 : vector<1x8x8x16xf32> to vector<8x8x16xf32>
    %c0_3 = arith.constant 0 : index
    %c0_4 = arith.constant 0 : index
    %c0_5 = arith.constant 0 : index
    %c0_6 = arith.constant 0 : index
    %2 = vector.load %arg2[%c0_3, %c0_4, %c0_5, %c0_6] : memref<1x8x8x16xf32, #tpu.memory_space<vmem>>, vector<1x8x8x16xf32>
    %3 = vector.shape_cast %2 : vector<1x8x8x16xf32> to vector<8x8x16xf32>
    %c0_7 = arith.constant 0 : index
    %c0_8 = arith.constant 0 : index
    %c0_9 = arith.constant 0 : index
    %c0_10 = arith.constant 0 : index
    %4 = vector.load %arg3[%c0_7, %c0_8, %c0_9, %c0_10] : memref<1x8x8x16xf32, #tpu.memory_space<vmem>>, vector<1x8x8x16xf32>
    %5 = vector.shape_cast %4 : vector<1x8x8x16xf32> to vector<8x8x16xf32>
    %cst = arith.constant 2.500000e-01 : f32
    %6 = vector.broadcast %cst : f32 to vector<8x8x16xf32>
    %7 = arith.mulf %1, %6 : vector<8x8x16xf32>
    "tpu.trace_start"() <{level = 10 : i32, message = "cqd,ckd->cqk"}> : () -> ()
    %cst_11 = arith.constant dense<0.000000e+00> : vector<8x8x8xf32>
    %8 = tpu.matmul %7, %3, %cst_11 {dimension_numbers = #tpu.dot_dimension_numbers<[2], [2], [1], [1], [0, 0, 0, 1, 1, 1], [0], [0]>} : vector<8x8x16xf32>, vector<8x8x16xf32>, vector<8x8x8xf32> -> vector<8x8x8xf32>
    "tpu.trace_stop"() : () -> ()
    %cst_12 = arith.constant dense<0xFF800000> : vector<8x8xf32>
    %9 = vector.multi_reduction <maximumf>, %8, %cst_12 [2] : vector<8x8x8xf32> to vector<8x8xf32>
    %10 = vector.shape_cast %9 : vector<8x8xf32> to vector<8x8x1xf32>
    %11 = vector.broadcast %10 : vector<8x8x1xf32> to vector<8x8x8xf32>
    %12 = arith.subf %8, %11 : vector<8x8x8xf32>
    %13 = math.exp %12 : vector<8x8x8xf32>
    %cst_13 = arith.constant dense<0.000000e+00> : vector<8x8xf32>
    %14 = vector.multi_reduction <add>, %13, %cst_13 [2] : vector<8x8x8xf32> to vector<8x8xf32>
    %15 = vector.shape_cast %14 : vector<8x8xf32> to vector<8x8x1xf32>
    %16 = math.log %15 : vector<8x8x1xf32>
    %17 = arith.addf %10, %16 : vector<8x8x1xf32>
    %18 = tpu.reciprocal %15 {approx = true} : vector<8x8x1xf32> -> vector<8x8x1xf32>
    %19 = vector.broadcast %18 : vector<8x8x1xf32> to vector<8x8x8xf32>
    %20 = arith.mulf %13, %19 : vector<8x8x8xf32>
    "tpu.trace_start"() <{level = 10 : i32, message = "cqk,ckd->cqd"}> : () -> ()
    %cst_14 = arith.constant dense<0.000000e+00> : vector<8x8x16xf32>
    %21 = tpu.matmul %20, %5, %cst_14 {dimension_numbers = #tpu.dot_dimension_numbers<[2], [1], [1], [2], [0, 0, 0, 1, 1, 2], [0], [0]>} : vector<8x8x8xf32>, vector<8x8x16xf32>, vector<8x8x16xf32> -> vector<8x8x16xf32>
    "tpu.trace_stop"() : () -> ()
    %c0_15 = arith.constant 0 : index
    %c0_16 = arith.constant 0 : index
    %c0_17 = arith.constant 0 : index
    %c0_18 = arith.constant 0 : index
    %22 = vector.load %arg4[%c0_15, %c0_16, %c0_17, %c0_18] : memref<1x8x8x16xf32, #tpu.memory_space<vmem>>, vector<1x8x8x16xf32>
    %23 = vector.shape_cast %22 : vector<1x8x8x16xf32> to vector<8x8x16xf32>
    %24 = vector.shape_cast %21 : vector<8x8x16xf32> to vector<1x8x8x16xf32>
    tpu.vector_store %arg4[%c0_15, %c0_16, %c0_17, %c0_18], %24 {strides = array<i32>} : memref<1x8x8x16xf32, #tpu.memory_space<vmem>>, vector<1x8x8x16xf32>,
    %25 = vector.shape_cast %17 : vector<8x8x1xf32> to vector<8x8xf32>
    %c0_19 = arith.constant 0 : index
    %c0_20 = arith.constant 0 : index
    %c0_21 = arith.constant 0 : index
    %26 = vector.load %arg5[%c0_19, %c0_20, %c0_21] : memref<1x8x8xf32, #tpu.memory_space<vmem>>, vector<1x8x8xf32>
    %27 = vector.shape_cast %26 : vector<1x8x8xf32> to vector<8x8xf32>
    %28 = vector.shape_cast %25 : vector<8x8xf32> to vector<1x8x8xf32>
    tpu.vector_store %arg5[%c0_19, %c0_20, %c0_21], %28 {strides = array<i32>} : memref<1x8x8xf32, #tpu.memory_space<vmem>>, vector<1x8x8xf32>,
    return
  }
  func.func @transform_0(%arg0: i32) -> (i32, i32, i32, i32) {
    %c0_i32 = arith.constant 0 : i32
    %c0_i32_0 = arith.constant 0 : i32
    %c0_i32_1 = arith.constant 0 : i32
    %c0_i32_2 = arith.constant 0 : i32
    return %arg0, %c0_i32, %c0_i32_0, %c0_i32_1 : i32, i32, i32, i32
  }
  func.func @transform_1(%arg0: i32) -> (i32, i32, i32, i32) {
    %c0_i32 = arith.constant 0 : i32
    %c0_i32_0 = arith.constant 0 : i32
    %c0_i32_1 = arith.constant 0 : i32
    %c0_i32_2 = arith.constant 0 : i32
    return %arg0, %c0_i32, %c0_i32_0, %c0_i32_1 : i32, i32, i32, i32
  }
  func.func @transform_2(%arg0: i32) -> (i32, i32, i32, i32) {
    %c0_i32 = arith.constant 0 : i32
    %c0_i32_0 = arith.constant 0 : i32
    %c0_i32_1 = arith.constant 0 : i32
    %c0_i32_2 = arith.constant 0 : i32
    return %arg0, %c0_i32, %c0_i32_0, %c0_i32_1 : i32, i32, i32, i32
  }
  func.func @transform_3(%arg0: i32) -> (i32, i32, i32, i32) {
    %c0_i32 = arith.constant 0 : i32
    %c0_i32_0 = arith.constant 0 : i32
    %c0_i32_1 = arith.constant 0 : i32
    %c0_i32_2 = arith.constant 0 : i32
    return %arg0, %c0_i32, %c0_i32_0, %c0_i32_1 : i32, i32, i32, i32
  }
  func.func @transform_4(%arg0: i32) -> (i32, i32, i32) {
    %c0_i32 = arith.constant 0 : i32
    %c0_i32_0 = arith.constant 0 : i32
    %c0_i32_1 = arith.constant 0 : i32
    return %arg0, %c0_i32, %c0_i32_0 : i32, i32, i32
  }
}

</mosaic_0001>

<bundles_post_ra>
// kernel: smyrf_attention_forward.1
= control target key start
LH: loop header
LB: loop body
LE: loop exit
PB: predicated region body
PF: predicated region fallthrough
CT: control target
= control target key end

     0   :  { %s1072_s15 = smov 0   ;;  %s1231_s0 = inlined_call_operand.vmem [shape: f32[2,8,8,16], index: 0, kind: input, shape index: {}]   ;;  %s1232_s1 = inlined_call_operand.vmem [shape: f32[2,8,8,16], index: 1, kind: input, shape index: {}]   ;;  %s1233_s2 = inlined_call_operand.vmem [shape: f32[2,8,8,16], index: 2, kind: input, shape index: {}]   ;;  %s1234_s3 = inlined_call_operand.vmem [shape: f32[2,8,8,16], index: 3, kind: output, shape index: {0}]   ;;  %s1235_s4 = inlined_call_operand.vmem [shape: f32[2,8,8], index: 4, kind: output, shape index: {1}]  }
   0x1 LB: > { %s939_s16 = sadd.s32 4294967295, %s1045_s15   ;;  %p943_p0 = scmp.ge.s32.totalorder %s1045_s15, 1  ;;  %s1045_s15 = sphi %s1072_s15, %s15_s15  }
   0x2   : > { %p185_p1 = scmp.lt.s32.totalorder %s1045_s15, 3 }
   0x4   : > { %p186_p2 = pnand %p943_p0, %p185_p1 }
   0x5   : > { %p225_p3 = scmp.lt.s32.totalorder (!%p186_p2), %s939_s16, 1 }
   0x6   : > { %189 = sbr.rel (%p186_p2) target bundleno = 558 (0x22e), region = 32 }
   0xb   : > { %s1237_s16 = smov (!%p225_p3, %s939_s16), 1  ;;  %vm281_vm0 = vcmask 130048   ;;  %vm490_vm1 = vcmask 64512   ;;  %vm813_vm2 = vcmask 1041409   ;;  %vm815_vm3 = vcmask 1042434  }
   0xc   : > { %s1083_s17 = sshll.u32 %s1237_s16, 6  ;;  %vm817_vm4 = vcmask 1043459   ;;  %vm819_vm5 = vcmask 1044484   ;;  %s952_s27 = sshll.u32 %s1237_s16, 3  ;;  %vm821_vm6 = vcmask 1045509   ;;  %vm823_vm7 = vcmask 1046534  }
   0xd   : > { %s234_s20 = scalar_lea.vmem %s1232_s1, %s1083_s17  ;;  %s1093_s23 = scalar_lea.vmem %s1231_s0, %s1083_s17  ;;  %vm825_vm8 = vcmask 1047559  }
   0xe   : > { %v257_v0 = vld [vmem:[%s234_s20] sm:$0xff]  ;;  %v259_v1 = vld [vmem:[%s234_s20 + $0x10] sm:$0xff]  ;;  %v258_v6 = vld [vmem:[%s234_s20 + $0x8] sm:$0xff]  ;;  %s239_s26 = scalar_lea.vmem %s1233_s2, %s1083_s17  ;;  %s248_s30 = scalar_lea.vmem %s1235_s4, %s952_s27 }
   0xf   : > { %v249_v2 = vld [vmem:[%s1093_s23] sm:$0xff]  ;;  %953 = vmatpush.xpose.msk.msra.mxu0 %vm281_vm0, %v257_v0  ;;  %957 = vmatpush.xpose.msk.msra.mxu2 %vm281_vm0, %v259_v1  ;;  %v251_v4 = vld [vmem:[%s1093_s23 + $0x10] sm:$0xff]  ;;  %v260_v8 = vld [vmem:[%s234_s20 + $0x18] sm:$0xff]  ;;  %s244_s7 = scalar_lea.vmem %s1234_s3, %s1083_s17 }
  0x10   : > { %v273_v3 = vmul.f32 0.25, %v249_v2  ;;  %v263_v5 = vld [vmem:[%s234_s20 + $0x30] sm:$0xff]  ;;  %v275_v7 = vmul.f32 0.25, %v251_v4  ;;  %955 = vmatpush.xpose.msk.msra.mxu1 %vm281_vm0, %v258_v6  ;;  %v250_v9 = vld [vmem:[%s1093_s23 + $0x8] sm:$0xff]  ;;  %v252_v10 = vld [vmem:[%s1093_s23 + $0x18] sm:$0xff]  ;;  %959 = vmatpush.xpose.msk.msra.mxu3 %vm281_vm0, %v260_v8 }
  0x11   : > { %v274_v11 = vmul.f32 0.25, %v250_v9  ;;  %v276_v12 = vmul.f32 0.25, %v252_v10  ;;  %v264_v13 = vld [vmem:[%s234_s20 + $0x38] sm:$0xff]  ;;  %v262_v14 = vld [vmem:[%s234_s20 + $0x28] sm:$0xff]  ;;  %v261_v15 = vld [vmem:[%s234_s20 + $0x20] sm:$0xff] }
  0x12   : > { %954 = vmatmul.msk.f32.vlgmr.msra.gmra.mxu0 %vm281_vm0, %v273_v3  ;;  %958 = vmatmul.msk.f32.vlgmr.msra.gmra.mxu2 %vm281_vm0, %v275_v7  ;;  %v255_v16 = vld [vmem:[%s1093_s23 + $0x30] sm:$0xff]  ;;  %v253_v17 = vld [vmem:[%s1093_s23 + $0x20] sm:$0xff]  ;;  %v254_v18 = vld [vmem:[%s1093_s23 + $0x28] sm:$0xff] }
  0x13   : > { %965 = vmatpush.xpose.msk.msrb.mxu2 %vm281_vm0, %v263_v5  ;;  %956 = vmatmul.msk.f32.vlgmr.msra.gmra.mxu1 %vm281_vm0, %v274_v11  ;;  %v256_v19 = vld [vmem:[%s1093_s23 + $0x38] sm:$0xff]  ;;  %v279_v20 = vmul.f32 0.25, %v255_v16  ;;  %v277_v21 = vmul.f32 0.25, %v253_v17  ;;  %v278_v22 = vmul.f32 0.25, %v254_v18  ;;  %v265_v16 = vld [vmem:[%s239_s26] sm:$0xff]  ;;  %v267_v17 = vld [vmem:[%s239_s26 + $0x10] sm:$0xff] }
  0x14   : > { %967 = vmatpush.xpose.msk.msrb.mxu3 %vm281_vm0, %v264_v13  ;;  %963 = vmatpush.xpose.msk.msrb.mxu1 %vm281_vm0, %v262_v14  ;;  %v280_v23 = vmul.f32 0.25, %v256_v19  ;;  %v268_v18 = vld [vmem:[%s239_s26 + $0x18] sm:$0xff]  ;;  %v266_v19 = vld [vmem:[%s239_s26 + $0x8] sm:$0xff] }
  0x15   : > { %960 = vmatmul.msk.f32.vlgmr.msra.gmra.mxu3 %vm281_vm0, %v276_v12  ;;  %961 = vmatpush.xpose.msk.msrb.mxu0 %vm281_vm0, %v261_v15 }
  0x17   : > { %667 = vmatpush.msra.mxu2 %v267_v17 }
  0x18   : > { %690 = vmatpush.msra.mxu3 %v268_v18  ;;  %644 = vmatpush.msra.mxu1 %v266_v19 }
  0x19   : > { %621 = vmatpush.msra.mxu0 %v265_v16 }
  0x1a   : > { %966 = vmatmul.msk.f32.vlgmr.msrb.gmra.mxu2 %vm281_vm0, %v279_v20  ;;  %962 = vmatmul.msk.f32.vlgmr.msrb.gmra.mxu0 %vm281_vm0, %v277_v21  ;;  %v271_v21 = vld [vmem:[%s239_s26 + $0x30] sm:$0xff] }
  0x1b   : > { %964 = vmatmul.msk.f32.vlgmr.msrb.gmra.mxu1 %vm281_vm0, %v278_v22  ;;  %v272_v22 = vld [vmem:[%s239_s26 + $0x38] sm:$0xff]  ;;  %759 = vmatpush.msrb.mxu2 %v271_v21 }
  0x1d   : > { %968 = vmatmul.msk.f32.vlgmr.msrb.gmra.mxu3 %vm281_vm0, %v280_v23  ;;  %v269_v23 = vld [vmem:[%s239_s26 + $0x20] sm:$0xff] }
  0x1e   : > { %782 = vmatpush.msrb.mxu3 %v272_v22  ;;  %713 = vmatpush.msrb.mxu0 %v269_v23 }
  0x8f   : > { %v305_v24 = vpop.f32.mrf.mxu0 }
  0x90   : > { %v491_v25 = vsel %vm490_vm1, %v305_v24, -inf  ;;  %v331_v26 = vpop.f32.mrf.mxu1 }
  0x91   : > { %492 = vmax.xlane.f32.xlu1 %v491_v25  ;;  %v494_v29 = vsel %vm490_vm1, %v331_v26, -inf }
  0x95   : > { %v357_v27 = vpop.f32.mrf.mxu2 }
  0x96   : > { %v497_v28 = vsel %vm490_vm1, %v357_v27, -inf }
  0x97   : > { %498 = vmax.xlane.f32.xlu0 %v497_v28  ;;  %v409_v36 = vpop.f32.mrf.mxu0 }
  0x98   : > { %v383_v30 = vpop.f32.mrf.mxu3  ;;  %v435_v31 = vpop.f32.mrf.mxu1  ;;  %v503_v39 = vsel %vm490_vm1, %v409_v36, -inf }
  0x99   : > { %495 = vmax.xlane.f32.xlu1 %v494_v29  ;;  %v500_v32 = vsel %vm490_vm1, %v383_v30, -inf  ;;  %v506_v35 = vsel %vm490_vm1, %v435_v31, -inf }
  0x9d   : > { %v461_v33 = vpop.f32.mrf.mxu2 }
  0x9e   : > { %v509_v34 = vsel %vm490_vm1, %v461_v33, -inf }
  0x9f   : > { %501 = vmax.xlane.f32.xlu0 %v500_v32  ;;  %510 = vmax.xlane.f32.xlu2 %v509_v34 }
  0xa0   : > { %v487_v37 = vpop.f32.mrf.mxu3 }
  0xa1   : > { %507 = vmax.xlane.f32.xlu1 %v506_v35  ;;  %v512_v38 = vsel %vm490_vm1, %v487_v37, -inf }
  0xa7   : > { %513 = vmax.xlane.f32.xlu2 %v512_v38  ;;  %504 = vmax.xlane.f32.xlu0 %v503_v39 }
 0x104   : > { %v1127_v40 = vpop.xlane.xlu1 %492 }
 0x105   : > { %v515_v41 = vsub.f32 %v305_v24, %v1127_v40 }
 0x107   : > { %v523_v42 = vmul.f32 1.442695, %v515_v41 }
 0x109   : > { %991 = vpow2.f32 %v523_v42 }
 0x10a   : > { %v1130_v43 = vpop.xlane.xlu0 %498 }
 0x10b   : > { %v517_v44 = vsub.f32 %v357_v27, %v1130_v43  ;;  %v270_v27 = vld [vmem:[%s239_s26 + $0x28] sm:$0xff] }
 0x10c   : > { %v1133_v45 = vpop.xlane.xlu1 %495  ;;  %736 = vmatpush.msrb.mxu1 %v270_v27 }
 0x10d   : > { %v527_v46 = vmul.f32 1.442695, %v517_v44  ;;  %v516_v47 = vsub.f32 %v331_v26, %v1133_v45 }
 0x10f   : > { %v1136_v48 = vpop.eup %991  ;;  %993 = vpow2.f32 %v527_v46  ;;  %v525_v50 = vmul.f32 1.442695, %v516_v47  ;;  %v803_v46 = vlaneseq }
 0x110   : > { %v539_v49 = vsel %vm490_vm1, %v1136_v48, 0.0 }
 0x111   : > { %540 = vadd.xlane.f32.xlu1 %v539_v49  ;;  %995 = vpow2.f32 %v525_v50 }
 0x112   : > { %v1140_v51 = vpop.xlane.xlu0 %501  ;;  %v1142_v52 = vpop.xlane.xlu2 %510 }
 0x113   : > { %v518_v53 = vsub.f32 %v383_v30, %v1140_v51  ;;  %v521_v56 = vsub.f32 %v461_v33, %v1142_v52 }
 0x114   : > { %v1150_v59 = vpop.xlane.xlu1 %507 }
 0x115   : > { %v1145_v54 = vpop.eup %993  ;;  %v529_v55 = vmul.f32 1.442695, %v518_v53  ;;  %v535_v58 = vmul.f32 1.442695, %v521_v56  ;;  %v520_v2 = vsub.f32 %v435_v31, %v1150_v59 }
 0x116   : > { %v545_v57 = vsel %vm490_vm1, %v1145_v54, 0.0 }
 0x117   : > { %997 = vpow2.f32 %v529_v55  ;;  %546 = vadd.xlane.f32.xlu2 %v545_v57  ;;  %v1156_v62 = vpop.eup %995  ;;  %v533_v7 = vmul.f32 1.442695, %v520_v2  ;;  %v804_v55 = vand.u32 127, %v803_v46 }
 0x118   : > { %999 = vpow2.f32 %v535_v58  ;;  %v542_v5 = vsel %vm490_vm1, %v1156_v62, 0.0 }
 0x11a   : > { %v1152_v60 = vpop.xlane.xlu2 %513  ;;  %v1154_v61 = vpop.xlane.xlu0 %504 }
 0x11b   : > { %v522_v63 = vsub.f32 %v487_v37, %v1152_v60  ;;  %v519_v0 = vsub.f32 %v409_v36, %v1154_v61 }
 0x11d   : > { %v1160_v1 = vpop.eup %997  ;;  %v537_v3 = vmul.f32 1.442695, %v522_v63  ;;  %v531_v4 = vmul.f32 1.442695, %v519_v0 }
 0x11e   : > { %v548_v6 = vsel %vm490_vm1, %v1160_v1, 0.0  ;;  %v1167_v8 = vpop.eup %999 }
 0x11f   : > { %1001 = vpow2.f32 %v537_v3  ;;  %543 = vadd.xlane.f32.xlu2 %v542_v5  ;;  %549 = vadd.xlane.f32.xlu0 %v548_v6  ;;  %v557_v12 = vsel %vm490_vm1, %v1167_v8, 0.0 }
 0x120   : > { %1003 = vpow2.f32 %v531_v4 }
 0x121   : > { %1005 = vpow2.f32 %v533_v7 }
 0x125   : > { %v1169_v9 = vpop.eup %1001 }
 0x126   : > { %v1171_v10 = vpop.eup %1003  ;;  %v560_v11 = vsel %vm490_vm1, %v1169_v9, 0.0 }
 0x127   : > { %561 = vadd.xlane.f32.xlu1 %v560_v11  ;;  %558 = vadd.xlane.f32.xlu0 %v557_v12  ;;  %v551_v13 = vsel %vm490_vm1, %v1171_v10, 0.0  ;;  %v1179_v14 = vpop.eup %1005 }
 0x128   : > { %552 = vadd.xlane.f32.xlu2 %v551_v13  ;;  %v554_v15 = vsel %vm490_vm1, %v1179_v14, 0.0 }
 0x12f   : > { %555 = vadd.xlane.f32.xlu0 %v554_v15 }
 0x184   : > { %v541_v20 = vpop.xlane.xlu1 %540 }
 0x185   : > { %1007 = vrcp.f32 %v541_v20 }
 0x18a   : > { %v547_v24 = vpop.xlane.xlu2 %546 }
 0x18b   : > { %v1008_v25 = vpop.eup %1007  ;;  %1009 = vrcp.f32 %v547_v24 }
 0x18c   : > { %v595_v26 = vmul.f32 %v1008_v25, %v1136_v48 }
 0x18e   : > { %969 = vmatmul.msk.f32.vlgmr.msra.gmra.mxu0 %vm490_vm1, %v595_v26 }
 0x191   : > { %v1010_v28 = vpop.eup %1009 }
 0x192   : > { %v544_v29 = vpop.xlane.xlu2 %543  ;;  %v550_v30 = vpop.xlane.xlu0 %549  ;;  %v597_v31 = vmul.f32 %v1010_v28, %v1145_v54 }
 0x193   : > { %1011 = vlog2.f32 %v544_v29 }
 0x194   : > { %1013 = vrcp.f32 %v544_v29  ;;  %971 = vmatmul.msk.f32.vlgmr.msra.gmra.mxu2 %vm490_vm1, %v597_v31 }
 0x195   : > { %1015 = vlog2.f32 %v541_v20 }
 0x196   : > { %1017 = vrcp.f32 %v550_v30 }
 0x197   : > { %1019 = vlog2.f32 %v547_v24 }
 0x198   : > { %1021 = vlog2.f32 %v550_v30 }
 0x199   : > { %v1012_v32 = vpop.eup %1011 }
 0x19a   : > { %v1014_v33 = vpop.eup %1013  ;;  %v562_v34 = vpop.xlane.xlu1 %561  ;;  %v566_v41 = vmul.f32 0.6931472, %v1012_v32 }
 0x19b   : > { %v559_v35 = vpop.xlane.xlu0 %558  ;;  %v1016_v36 = vpop.eup %1015  ;;  %v596_v37 = vmul.f32 %v1014_v33, %v1156_v62  ;;  %1023 = vlog2.f32 %v562_v34 }
 0x19c   : > { %v553_v38 = vpop.xlane.xlu2 %552  ;;  %v1018_v39 = vpop.eup %1017  ;;  %1025 = vrcp.f32 %v562_v34  ;;  %v564_v47 = vmul.f32 0.6931472, %v1016_v36  ;;  %v580_v49 = vadd.f32 %v566_v41, %v1133_v45 }
 0x19d   : > { %v598_v42 = vmul.f32 %v1018_v39, %v1160_v1  ;;  %1027 = vlog2.f32 %v553_v38  ;;  %970 = vmatmul.msk.f32.vlgmr.msra.gmra.mxu1 %vm490_vm1, %v596_v37  ;;  %v1020_v44 = vpop.eup %1019 }
 0x19e   : > { %1029 = vrcp.f32 %v553_v38  ;;  %v1022_v48 = vpop.eup %1021  ;;  %v568_v53 = vmul.f32 0.6931472, %v1020_v44  ;;  %v579_v56 = vadd.f32 %v564_v47, %v1127_v40  ;;  %v806_v0 = vperm.slane %v580_v49, %v804_v55 }
 0x19f   : > { %1031 = vlog2.f32 %v559_v35  ;;  %972 = vmatmul.msk.f32.vlgmr.msra.gmra.mxu3 %vm490_vm1, %v598_v42  ;;  %v570_v1 = vmul.f32 0.6931472, %v1022_v48 }
 0x1a0   : > { %1033 = vrcp.f32 %v559_v35  ;;  %v581_v45 = vadd.f32 %v568_v53, %v1130_v43  ;;  %v805_v6 = vperm.slane %v579_v56, %v804_v55 }
 0x1a1   : > { %v1024_v50 = vpop.eup %1023  ;;  %v582_v12 = vadd.f32 %v570_v1, %v1140_v51 }
 0x1a2   : > { %v1026_v54 = vpop.eup %1025  ;;  %v578_v43 = vmul.f32 0.6931472, %v1024_v50  ;;  %v807_v15 = vperm.slane %v581_v45, %v804_v55 }
 0x1a3   : > { %v556_v57 = vpop.xlane.xlu0 %555  ;;  %v1028_v58 = vpop.eup %1027  ;;  %v602_v62 = vmul.f32 %v1026_v54, %v1169_v9  ;;  %v814_v9 = vsel %vm813_vm2, %v806_v0, %v805_v6  ;;  %v808_v19 = vperm.slane %v582_v12, %v804_v55 }
 0x1a4   : > { %1035 = vlog2.f32 %v556_v57  ;;  %v1030_v63 = vpop.eup %1029  ;;  %v572_v2 = vmul.f32 0.6931472, %v1028_v58  ;;  %v816_v16 = vsel %vm815_vm3, %v807_v15, %v814_v9  ;;  %v586_v20 = vadd.f32 %v578_v43, %v1152_v60 }
 0x1a5   : > { %1037 = vrcp.f32 %v556_v57  ;;  %v1032_v3 = vpop.eup %1031  ;;  %v599_v4 = vmul.f32 %v1030_v63, %v1171_v10  ;;  %v818_v21 = vsel %vm817_vm4, %v808_v19, %v816_v16 }
 0x1a6   : > { %v1034_v5 = vpop.eup %1033  ;;  %v583_v40 = vadd.f32 %v572_v2, %v1154_v61  ;;  %v576_v7 = vmul.f32 0.6931472, %v1032_v3 }
 0x1a7   : > { %v601_v11 = vmul.f32 %v1034_v5, %v1167_v8  ;;  %973 = vmatmul.msk.f32.vlgmr.msrb.gmra.mxu0 %vm490_vm1, %v599_v4  ;;  %976 = vmatmul.msk.f32.vlgmr.msrb.gmra.mxu3 %vm490_vm1, %v602_v62 }
 0x1a8   : > { %v809_v17 = vperm.slane %v583_v40, %v804_v55  ;;  %v585_v8 = vadd.f32 %v576_v7, %v1142_v52  ;;  %v812_v52 = vperm.slane %v586_v20, %v804_v55 }
 0x1a9   : > { %975 = vmatmul.msk.f32.vlgmr.msrb.gmra.mxu2 %vm490_vm1, %v601_v11 }
 0x1aa   : > { %v1036_v13 = vpop.eup %1035  ;;  %v820_v23 = vsel %vm819_vm5, %v809_v17, %v818_v21  ;;  %v811_v24 = vperm.slane %v585_v8, %v804_v55 }
 0x1ab   : > { %v1038_v10 = vpop.eup %1037  ;;  %v574_v61 = vmul.f32 0.6931472, %v1036_v13 }
 0x1ac   : > { %v600_v18 = vmul.f32 %v1038_v10, %v1179_v14 }
 0x1ad   : > { %v584_v51 = vadd.f32 %v574_v61, %v1150_v59 }
 0x1ae   : > { %974 = vmatmul.msk.f32.vlgmr.msrb.gmra.mxu1 %vm490_vm1, %v600_v18 }
 0x1af   : > { %v810_v22 = vperm.slane %v584_v51, %v804_v55 }
 0x1b1   : > { %v822_v60 = vsel %vm821_vm6, %v810_v22, %v820_v23 }
 0x1b2   : > { %v824_v14 = vsel %vm823_vm7, %v811_v24, %v822_v60 }
 0x1b3   : > { %v826_v25 = vsel %vm825_vm8, %v812_v52, %v824_v14 }
 0x1b4   : > { %828 = vst.msk [vmem:[%s248_s30] sm:$0xff] %vm490_vm1, %v826_v25 }
 0x20b   : > { %v623_v59 = vpop.f32.mrf.mxu0 }
 0x20c   : > { %787 = vst.msk [vmem:[%s244_s7] sm:$0xff] %vm281_vm0, %v623_v59 }
 0x217   : > { %v669_v26 = vpop.f32.mrf.mxu2 }
 0x218   : > { %789 = vst.msk [vmem:[%s244_s7 + $0x10] sm:$0xff] %vm281_vm0, %v669_v26 }
 0x21a   : > { %v646_v27 = vpop.f32.mrf.mxu1 }
 0x21b   : > { %788 = vst.msk [vmem:[%s244_s7 + $0x8] sm:$0xff] %vm281_vm0, %v646_v27 }
 0x222   : > { %v692_v28 = vpop.f32.mrf.mxu3 }
 0x223   : > { %790 = vst.msk [vmem:[%s244_s7 + $0x18] sm:$0xff] %vm281_vm0, %v692_v28 }
 0x224   : > { %v715_v29 = vpop.f32.mrf.mxu0 }
 0x225   : > { %791 = vst.msk [vmem:[%s244_s7 + $0x20] sm:$0xff] %vm281_vm0, %v715_v29 }
 0x22a   : > { %v784_v30 = vpop.f32.mrf.mxu3 }
 0x22b   : > { %v738_v31 = vpop.f32.mrf.mxu1  ;;  %794 = vst.msk [vmem:[%s244_s7 + $0x38] sm:$0xff] %vm281_vm0, %v784_v30 }
 0x22c   : > { %v761_v32 = vpop.f32.mrf.mxu2  ;;  %792 = vst.msk [vmem:[%s244_s7 + $0x28] sm:$0xff] %vm281_vm0, %v738_v31 }
 0x22d   : > { %793 = vst.msk [vmem:[%s244_s7 + $0x30] sm:$0xff] %vm281_vm0, %v761_v32 }
 0x22e PF: > { %s15_s15 = sadd.s32 1, %s1045_s15  }
 0x22f   : > { %p12_p4 = scmp.ge.s32.totalorder %s15_s15, 4  }
 0x231   :  { %14 = sbr.rel (!%p12_p4) target bundleno = 1 (0x1), region = 80 }

</bundles_post_ra>
